<compile_context>
chip_gen: v5e
topology: v5e:2x2
jax: 0.10.0
libtpu: 0.0.40
codegen_flags: <defaults>
</compile_context>

<pallas_src>
import functools

import jax
import jax.numpy as jnp
from jax.experimental import pallas as pl
from jax.experimental.pallas import tpu as pltpu


def _align(n, a):
    return ((n + a - 1) // a) * a


# ----------------------------------------------------------------------------- kernel
def _ode_deriv_kernel(xin_ref, wpack_ref, fpack_ref, out_ref, *,
                      B, N, F, T, K, Fout,
                      off_watt, off_csum, off_vst, off_theta):
    # xin_ref  : (B*N, T*F + 1) f32  -- x lane-flattened (t, f) + time-embed column
    # wpack_ref: (rows, width)  bf16 -- [watt | colsum(watt) | Vs^T | theta_wide]
    # fpack_ref: (K+1, N, N)    f32  -- [bs^T ; cheb_0^T ; ... ; cheb_{K-1}^T]
    # out_ref  : (B*N, Fout)    f32
    TF = T * F
    R = B * N

    # ---- dynamic pack ------------------------------------------------------
    xin = xin_ref[...]                                     # (R, T*F + 1) f32
    x16 = xin[:, :TF].astype(jnp.bfloat16)                 # (R, T*F)
    tv = xin[:, TF:TF + 1]                                 # (R, 1) f32 time embedding

    # ---- static weights (pre-cast bf16 in the wrapper: no in-kernel packs) --
    watt = wpack_ref[off_watt:off_watt + TF, :2 * T]                     # (T*F, 2T)
    csum = wpack_ref[off_csum:off_csum + 1, :2 * T].astype(jnp.float32)  # (1, 2T)
    vst = wpack_ref[off_vst:off_vst + N, :N]                             # (N, N) = Vs^T
    theta_w = wpack_ref[off_theta:off_theta + F, :K * Fout]              # (F, K*Fout)

    bst = fpack_ref[0]                                     # (N, N)    f32  = bs^T
    chebt = fpack_ref[1:1 + K]                             # (K, N, N) f32  = cheb^T

    # ---- spatial attention: fused projection, time embedding folded in -----
    #   (x + tv*1) @ [W1xW2 | W3xI]  ==  x @ watt + tv * colsum(watt)
    proj = jnp.dot(x16, watt, preferred_element_type=jnp.float32)        # (R, 2T)
    proj = proj + tv * csum                                              # f32 correction

    lhs = proj[:, :T].reshape(B, N, T).astype(jnp.bfloat16)              # (x@W1)@W2
    rhs = proj[:, T:].reshape(B, N, T).astype(jnp.bfloat16)              # W3@x

    # product^T: prod_t[b, p, q] = product[b, q, p]; one batched MXU dot,
    # both operands contract their last dim -> no in-kernel transposes.
    prod_t = jnp.einsum("bpt,bqt->bpq", rhs, lhs,
                        preferred_element_type=jnp.float32)              # (B, N, N)
    sig_t = jax.nn.sigmoid(prod_t + bst[None])                           # f32 (EUP)

    # s^T = sigmoid(product + bs)^T @ Vs^T : Vs shared -> single (B*N, N) dot.
    s_t = jnp.dot(sig_t.reshape(R, N).astype(jnp.bfloat16), vst,
                  preferred_element_type=jnp.float32).reshape(B, N, N)

    # softmax over the original dim=1 == last axis of the transposed form.
    s_t = s_t - jnp.max(s_t, axis=-1, keepdims=True)
    e = jnp.exp(s_t)
    inv = pl.reciprocal(jnp.sum(e, axis=-1, keepdims=True), approx=True)
    satt_t = e * inv                                                     # (B, N, N) f32

    # ---- Chebyshev graph conv with SAt on the t=0 slice ---------------------
    # graph signal: time embedding added only to the F leading (t=0) lanes.
    gs = xin[:, :F] + tv                                                 # (R, F) f32
    # gs @ Theta_k for every k in a single dot (theta_w = [Theta_0|...|Theta_{K-1}]).
    gst16 = jnp.dot(gs.astype(jnp.bfloat16), theta_w,
                    preferred_element_type=jnp.float32).astype(jnp.bfloat16)  # (R, K*Fout)

    # hoisted (T_k * SAt)^T: one f32 multiply + one bf16 cast for all (b, k).
    a_all = (chebt[None] * satt_t[:, None]).astype(jnp.bfloat16)         # (B, K, N, N)

    # out = relu( sum_k (T_k*SAt)^T @ (gs @ Theta_k) ) -- accumulating dots,
    # no lane-axis concatenation; K is small & static so the loop unrolls.
    acc = None
    for k in range(K):
        g_k = gst16[:, k * Fout:(k + 1) * Fout].reshape(B, N, Fout)
        term = jnp.einsum("bpq,bqo->bpo", a_all[:, k], g_k,
                          preferred_element_type=jnp.float32)            # (B, N, Fout)
        acc = term if acc is None else acc + term

    # (B*N, Fout) store; wrapper reshape back to (B, N, Fout) is metadata-only.
    out_ref[...] = jnp.maximum(acc, 0.0).reshape(R, Fout).astype(out_ref.dtype)


# ----------------------------------------------------------------------------- wrapper
@jax.jit
def ode_derivative_fun(t, x, params):
    """t: scalar time stamp, x: (B, N, F, T) float32 -> derivative (B, N, Fout)."""
    B, N, F, T = x.shape
    K, F_in, Fout = params["theta"].shape
    TF = T * F

    # ---- static parameter folding / packing (tiny; fused into surrounding jit).
    # TODO(synk): in a real ODE integrator, precompute wpack/fpack once and keep
    # them resident across steps so the static-weight DMAs are amortized.
    w1, w2, w3 = params["W1"], params["W2"], params["W3"]
    # M1[(t, f), t'] = W1[t] * W2[f, t']   (folds the x@W1 contraction into W2)
    m1 = (w1[:, None, None] * w2[None, :, :]).reshape(TF, T)
    # M2[(t, f), t'] = W3[f] * delta(t, t') (expresses W3@x as a matmul)
    m2 = (jnp.eye(T, dtype=jnp.float32)[:, None, :] * w3[None, :, None]).reshape(TF, T)
    watt = jnp.concatenate([m1, m2], axis=1)                       # (T*F, 2T)
    csum = jnp.sum(watt, axis=0, keepdims=True)                    # (1, 2T) for tv fold
    theta_wide = jnp.transpose(params["theta"], (1, 0, 2)).reshape(F_in, K * Fout)

    # single bf16 static pack (one DMA); sections start on 16-row tile boundaries.
    width = max(2 * T, N, K * Fout)
    off_watt = 0
    off_csum = _align(off_watt + TF, 16)
    off_vst = _align(off_csum + 1, 16)
    off_theta = _align(off_vst + N, 16)
    rows = _align(off_theta + F_in, 16)

    wpack = jnp.zeros((rows, width), jnp.bfloat16)

    def put(buf, row, mat):
        return buf.at[row:row + mat.shape[0], :mat.shape[1]].set(mat.astype(jnp.bfloat16))

    wpack = put(wpack, off_watt, watt)
    wpack = put(wpack, off_csum, csum)
    wpack = put(wpack, off_vst, params["Vs"].T)
    wpack = put(wpack, off_theta, theta_wide)

    # single f32 static pack (one DMA): elementwise users (bias add, cheb*SAt) stay f32.
    fpack = jnp.concatenate(
        [params["bs"].T[None], jnp.transpose(params["cheb"], (0, 2, 1))], axis=0)

    # dynamic pack (one DMA): x flattened to (B*N, T*F) with (t, f) lane order so
    # the t=0 graph signal is the first F lanes, plus the time-embedding column.
    tv = params["w_te"][:, 0] * t + params["b_te"]                 # nn.Linear(1, N)
    tv_rows = jnp.tile(tv, B).reshape(B * N, 1).astype(jnp.float32)
    x_tf = jnp.transpose(x, (0, 1, 3, 2)).reshape(B * N, TF)
    xin = jnp.concatenate([x_tf, tv_rows], axis=1)                 # (B*N, T*F + 1)

    kernel = functools.partial(
        _ode_deriv_kernel, B=B, N=N, F=F, T=T, K=K, Fout=Fout,
        off_watt=off_watt, off_csum=off_csum, off_vst=off_vst, off_theta=off_theta)

    out = pl.pallas_call(
        kernel,
        out_shape=jax.ShapeDtypeStruct((B * N, Fout), jnp.float32),
        # Gridless: everything (a few KiB) fits in VMEM for one invocation.
        # At production sizes, add a ("parallel",) batch/node grid axis instead.
        in_specs=[pl.BlockSpec(memory_space=pltpu.MemorySpace.VMEM)] * 3,
        out_specs=pl.BlockSpec(memory_space=pltpu.MemorySpace.VMEM),
    )(xin, wpack, fpack)
    return out.reshape(B, N, Fout)


# ----------------------------------------------------------------------------- params
def _chebyshev_polynomials(N, K):
    # Deterministic ring-graph normalized Laplacian, scaled (lambda_max = 2).
    idx = jnp.arange(N)
    adj = (jnp.zeros((N, N), jnp.float32)
           .at[idx, (idx + 1) % N].set(1.0)
           .at[idx, (idx - 1) % N].set(1.0))
    deg = jnp.sum(adj, axis=1)
    d_inv_sqrt = 1.0 / jnp.sqrt(deg)
    lap = jnp.eye(N, dtype=jnp.float32) - (d_inv_sqrt[:, None] * adj * d_inv_sqrt[None, :])
    l_tilde = lap - jnp.eye(N, dtype=jnp.float32)          # 2*L/lambda_max - I
    polys = [jnp.eye(N, dtype=jnp.float32), l_tilde]
    for _ in range(2, K):
        polys.append(2.0 * l_tilde @ polys[-1] - polys[-2])
    return jnp.stack(polys[:K], axis=0)                    # (K, N, N)


def init_params(key, N, F, T, K):
    ks = jax.random.split(key, 8)
    s = 0.1
    return {
        "w_te": jax.random.normal(ks[0], (N, 1), jnp.float32) * s,   # nn.Linear(1, N).weight
        "b_te": jax.random.normal(ks[1], (N,), jnp.float32) * s,     # nn.Linear(1, N).bias
        "W1": jax.random.normal(ks[2], (T,), jnp.float32) * s,
        "W2": jax.random.normal(ks[3], (F, T), jnp.float32) * s,
        "W3": jax.random.normal(ks[4], (F,), jnp.float32) * s,
        "bs": jax.random.normal(ks[5], (N, N), jnp.float32) * s,
        "Vs": jax.random.normal(ks[6], (N, N), jnp.float32) * s,
        "theta": jax.random.normal(ks[7], (K, F, F), jnp.float32) * s,
        "cheb": _chebyshev_polynomials(N, K),
    }


# ----------------------------------------------------------------------------- reference
def reference(t, x, params):
    hp = jax.lax.Precision.HIGHEST
    K = params["theta"].shape[0]
    tv = params["w_te"][:, 0] * t + params["b_te"]                       # (N,)
    xx = x + tv[None, :, None, None]
    lhs = jnp.einsum("bnft,t->bnf", xx, params["W1"], precision=hp)
    lhs = jnp.einsum("bnf,ft->bnt", lhs, params["W2"], precision=hp)
    rhs = jnp.einsum("f,bnft->bnt", params["W3"], xx, precision=hp)
    product = jnp.einsum("bit,bjt->bij", lhs, rhs, precision=hp)
    sig = jax.nn.sigmoid(product + params["bs"][None])
    s = jnp.einsum("ij,bjk->bik", params["Vs"], sig, precision=hp)
    s_att = jax.nn.softmax(s, axis=1)
    gs = xx[:, :, :, 0]
    out = 0.0
    for k in range(K):
        t_k_at = params["cheb"][k][None] * s_att
        rhs_k = jnp.einsum("bij,bif->bjf", t_k_at, gs, precision=hp)
        out = out + jnp.einsum("bjf,fo->bjo", rhs_k, params["theta"][k], precision=hp)
    return jax.nn.relu(out)


# ----------------------------------------------------------------------------- main
if __name__ == "__main__":
    B, N, F, T, K = 2, 16, 4, 8, 3
    key = jax.random.PRNGKey(0)
    kx, kp = jax.random.split(key)
    x = jax.random.normal(kx, (B, N, F, T), jnp.float32)
    t = jnp.float32(0.5)
    params = init_params(kp, N, F, T, K)

    out = jax.block_until_ready(ode_derivative_fun(t, x, params))
    ref = reference(t, x, params)

    assert out.shape == (B, N, F), out.shape
    assert bool(jnp.all(jnp.isfinite(out)))
    assert bool(jnp.allclose(out, ref, rtol=2e-2, atol=2e-2)), (
        "max abs diff = %f" % float(jnp.max(jnp.abs(out - ref))))
    print("KERNEL_OK")
</pallas_src>

<mosaic_0001>
module attributes {stable_mosaic.version = 11 : i64} {
  func.func @_ode_deriv_kernel(%arg0: memref<32x33xf32, #tpu.memory_space<vmem>>, %arg1: memref<80x16xbf16, #tpu.memory_space<vmem>>, %arg2: memref<4x16x16xf32, #tpu.memory_space<vmem>>, %arg3: memref<32x4xf32, #tpu.memory_space<vmem>>) attributes {dimension_semantics = [], scalar_prefetch = 0 : i64, scratch_operands = 0 : i64, tpu.core_type = #tpu.core_type<tc>} {
    %c0 = arith.constant 0 : index
    %c0_0 = arith.constant 0 : index
    %0 = vector.load %arg0[%c0, %c0_0] : memref<32x33xf32, #tpu.memory_space<vmem>>, vector<32x33xf32>
    %1 = vector.extract_strided_slice %0 {offsets = [0, 0], sizes = [32, 32], strides = [1, 1]} : vector<32x33xf32> to vector<32x32xf32>
    %2 = arith.truncf %1 : vector<32x32xf32> to vector<32x32xbf16>
    %3 = vector.extract_strided_slice %0 {offsets = [0, 32], sizes = [32, 1], strides = [1, 1]} : vector<32x33xf32> to vector<32x1xf32>
    %c0_1 = arith.constant 0 : index
    %c0_2 = arith.constant 0 : index
    %4 = vector.load %arg1[%c0_1, %c0_2] : memref<80x16xbf16, #tpu.memory_space<vmem>>, vector<32x16xbf16>
    %c32 = arith.constant 32 : index
    %c0_3 = arith.constant 0 : index
    %5 = vector.load %arg1[%c32, %c0_3] : memref<80x16xbf16, #tpu.memory_space<vmem>>, vector<1x16xbf16>
    %6 = arith.extf %5 : vector<1x16xbf16> to vector<1x16xf32>
    %c48 = arith.constant 48 : index
    %c0_4 = arith.constant 0 : index
    %7 = vector.load %arg1[%c48, %c0_4] : memref<80x16xbf16, #tpu.memory_space<vmem>>, vector<16x16xbf16>
    %c64 = arith.constant 64 : index
    %c0_5 = arith.constant 0 : index
    %8 = vector.load %arg1[%c64, %c0_5] : memref<80x16xbf16, #tpu.memory_space<vmem>>, vector<4x12xbf16>
    %c0_6 = arith.constant 0 : index
    %c0_7 = arith.constant 0 : index
    %c0_8 = arith.constant 0 : index
    %9 = vector.load %arg2[%c0_6, %c0_7, %c0_8] : memref<4x16x16xf32, #tpu.memory_space<vmem>>, vector<1x16x16xf32>
    %10 = vector.shape_cast %9 : vector<1x16x16xf32> to vector<16x16xf32>
    %c1 = arith.constant 1 : index
    %c0_9 = arith.constant 0 : index
    %c0_10 = arith.constant 0 : index
    %11 = vector.load %arg2[%c1, %c0_9, %c0_10] : memref<4x16x16xf32, #tpu.memory_space<vmem>>, vector<3x16x16xf32>
    %cst = arith.constant dense<0.000000e+00> : vector<32x16xf32>
    %12 = tpu.matmul %2, %4, %cst {dimension_numbers = #tpu.dot_dimension_numbers<[1], [0], [0], [1], [0, 0, 1, 1], [], []>} : vector<32x32xbf16>, vector<32x16xbf16>, vector<32x16xf32> -> vector<32x16xf32>
    %13 = vector.broadcast %3 : vector<32x1xf32> to vector<32x16xf32>
    %14 = vector.broadcast %6 : vector<1x16xf32> to vector<32x16xf32>
    %15 = arith.mulf %13, %14 : vector<32x16xf32>
    %16 = arith.addf %12, %15 : vector<32x16xf32>
    %17 = vector.extract_strided_slice %16 {offsets = [0, 0], sizes = [32, 8], strides = [1, 1]} : vector<32x16xf32> to vector<32x8xf32>
    %18 = vector.shape_cast %17 : vector<32x8xf32> to vector<2x16x8xf32>
    %19 = arith.truncf %18 : vector<2x16x8xf32> to vector<2x16x8xbf16>
    %20 = vector.extract_strided_slice %16 {offsets = [0, 8], sizes = [32, 8], strides = [1, 1]} : vector<32x16xf32> to vector<32x8xf32>
    %21 = vector.shape_cast %20 : vector<32x8xf32> to vector<2x16x8xf32>
    %22 = arith.truncf %21 : vector<2x16x8xf32> to vector<2x16x8xbf16>
    "tpu.trace_start"() <{level = 10 : i32, message = "bpt,bqt->bpq"}> : () -> ()
    %cst_11 = arith.constant dense<0.000000e+00> : vector<2x16x16xf32>
    %23 = tpu.matmul %22, %19, %cst_11 {dimension_numbers = #tpu.dot_dimension_numbers<[2], [2], [1], [1], [0, 0, 0, 1, 1, 1], [0], [0]>} : vector<2x16x8xbf16>, vector<2x16x8xbf16>, vector<2x16x16xf32> -> vector<2x16x16xf32>
    "tpu.trace_stop"() : () -> ()
    %24 = vector.shape_cast %10 : vector<16x16xf32> to vector<1x16x16xf32>
    %25 = vector.broadcast %24 : vector<1x16x16xf32> to vector<2x16x16xf32>
    %26 = arith.addf %23, %25 : vector<2x16x16xf32>
    %27 = arith.negf %26 : vector<2x16x16xf32>
    %28 = math.exp %27 : vector<2x16x16xf32>
    %cst_12 = arith.constant 1.000000e+00 : f32
    %29 = vector.broadcast %cst_12 : f32 to vector<2x16x16xf32>
    %30 = arith.addf %29, %28 : vector<2x16x16xf32>
    %31 = arith.divf %29, %30 : vector<2x16x16xf32>
    %32 = vector.shape_cast %31 : vector<2x16x16xf32> to vector<32x16xf32>
    %33 = arith.truncf %32 : vector<32x16xf32> to vector<32x16xbf16>
    %cst_13 = arith.constant dense<0.000000e+00> : vector<32x16xf32>
    %34 = tpu.matmul %33, %7, %cst_13 {dimension_numbers = #tpu.dot_dimension_numbers<[1], [0], [0], [1], [0, 0, 1, 1], [], []>} : vector<32x16xbf16>, vector<16x16xbf16>, vector<32x16xf32> -> vector<32x16xf32>
    %35 = vector.shape_cast %34 : vector<32x16xf32> to vector<2x16x16xf32>
    %cst_14 = arith.constant dense<0xFF800000> : vector<2x16xf32>
    %36 = vector.multi_reduction <maximumf>, %35, %cst_14 [2] : vector<2x16x16xf32> to vector<2x16xf32>
    %37 = vector.shape_cast %36 : vector<2x16xf32> to vector<2x16x1xf32>
    %38 = vector.broadcast %37 : vector<2x16x1xf32> to vector<2x16x16xf32>
    %39 = arith.subf %35, %38 : vector<2x16x16xf32>
    %40 = math.exp %39 : vector<2x16x16xf32>
    %cst_15 = arith.constant dense<0.000000e+00> : vector<2x16xf32>
    %41 = vector.multi_reduction <add>, %40, %cst_15 [2] : vector<2x16x16xf32> to vector<2x16xf32>
    %42 = vector.shape_cast %41 : vector<2x16xf32> to vector<2x16x1xf32>
    %43 = tpu.reciprocal %42 {approx = true} : vector<2x16x1xf32> -> vector<2x16x1xf32>
    %44 = vector.broadcast %43 : vector<2x16x1xf32> to vector<2x16x16xf32>
    %45 = arith.mulf %40, %44 : vector<2x16x16xf32>
    %46 = vector.extract_strided_slice %0 {offsets = [0, 0], sizes = [32, 4], strides = [1, 1]} : vector<32x33xf32> to vector<32x4xf32>
    %47 = vector.broadcast %3 : vector<32x1xf32> to vector<32x4xf32>
    %48 = arith.addf %46, %47 : vector<32x4xf32>
    %49 = arith.truncf %48 : vector<32x4xf32> to vector<32x4xbf16>
    %cst_16 = arith.constant dense<0.000000e+00> : vector<32x12xf32>
    %50 = tpu.matmul %49, %8, %cst_16 {dimension_numbers = #tpu.dot_dimension_numbers<[1], [0], [0], [1], [0, 0, 1, 1], [], []>} : vector<32x4xbf16>, vector<4x12xbf16>, vector<32x12xf32> -> vector<32x12xf32>
    %51 = arith.truncf %50 : vector<32x12xf32> to vector<32x12xbf16>
    %52 = vector.shape_cast %11 : vector<3x16x16xf32> to vector<1x3x16x16xf32>
    %53 = vector.shape_cast %45 : vector<2x16x16xf32> to vector<2x1x16x16xf32>
    %54 = vector.broadcast %52 : vector<1x3x16x16xf32> to vector<2x3x16x16xf32>
    %55 = vector.broadcast %53 : vector<2x1x16x16xf32> to vector<2x3x16x16xf32>
    %56 = arith.mulf %54, %55 : vector<2x3x16x16xf32>
    %57 = arith.truncf %56 : vector<2x3x16x16xf32> to vector<2x3x16x16xbf16>
    %58 = vector.extract_strided_slice %51 {offsets = [0, 0], sizes = [32, 4], strides = [1, 1]} : vector<32x12xbf16> to vector<32x4xbf16>
    %59 = vector.shape_cast %58 : vector<32x4xbf16> to vector<2x16x4xbf16>
    %60 = vector.extract_strided_slice %57 {offsets = [0, 0, 0, 0], sizes = [2, 1, 16, 16], strides = [1, 1, 1, 1]} : vector<2x3x16x16xbf16> to vector<2x1x16x16xbf16>
    %61 = vector.shape_cast %60 : vector<2x1x16x16xbf16> to vector<2x16x16xbf16>
    "tpu.trace_start"() <{level = 10 : i32, message = "bpq,bqo->bpo"}> : () -> ()
    %cst_17 = arith.constant dense<0.000000e+00> : vector<2x16x4xf32>
    %62 = tpu.matmul %61, %59, %cst_17 {dimension_numbers = #tpu.dot_dimension_numbers<[2], [1], [1], [2], [0, 0, 0, 1, 1, 2], [0], [0]>} : vector<2x16x16xbf16>, vector<2x16x4xbf16>, vector<2x16x4xf32> -> vector<2x16x4xf32>
    "tpu.trace_stop"() : () -> ()
    %63 = vector.extract_strided_slice %51 {offsets = [0, 4], sizes = [32, 4], strides = [1, 1]} : vector<32x12xbf16> to vector<32x4xbf16>
    %64 = vector.shape_cast %63 : vector<32x4xbf16> to vector<2x16x4xbf16>
    %65 = vector.extract_strided_slice %57 {offsets = [0, 1, 0, 0], sizes = [2, 1, 16, 16], strides = [1, 1, 1, 1]} : vector<2x3x16x16xbf16> to vector<2x1x16x16xbf16>
    %66 = vector.shape_cast %65 : vector<2x1x16x16xbf16> to vector<2x16x16xbf16>
    "tpu.trace_start"() <{level = 10 : i32, message = "bpq,bqo->bpo"}> : () -> ()
    %cst_18 = arith.constant dense<0.000000e+00> : vector<2x16x4xf32>
    %67 = tpu.matmul %66, %64, %cst_18 {dimension_numbers = #tpu.dot_dimension_numbers<[2], [1], [1], [2], [0, 0, 0, 1, 1, 2], [0], [0]>} : vector<2x16x16xbf16>, vector<2x16x4xbf16>, vector<2x16x4xf32> -> vector<2x16x4xf32>
    "tpu.trace_stop"() : () -> ()
    %68 = arith.addf %62, %67 : vector<2x16x4xf32>
    %69 = vector.extract_strided_slice %51 {offsets = [0, 8], sizes = [32, 4], strides = [1, 1]} : vector<32x12xbf16> to vector<32x4xbf16>
    %70 = vector.shape_cast %69 : vector<32x4xbf16> to vector<2x16x4xbf16>
    %71 = vector.extract_strided_slice %57 {offsets = [0, 2, 0, 0], sizes = [2, 1, 16, 16], strides = [1, 1, 1, 1]} : vector<2x3x16x16xbf16> to vector<2x1x16x16xbf16>
    %72 = vector.shape_cast %71 : vector<2x1x16x16xbf16> to vector<2x16x16xbf16>
    "tpu.trace_start"() <{level = 10 : i32, message = "bpq,bqo->bpo"}> : () -> ()
    %cst_19 = arith.constant dense<0.000000e+00> : vector<2x16x4xf32>
    %73 = tpu.matmul %72, %70, %cst_19 {dimension_numbers = #tpu.dot_dimension_numbers<[2], [1], [1], [2], [0, 0, 0, 1, 1, 2], [0], [0]>} : vector<2x16x16xbf16>, vector<2x16x4xbf16>, vector<2x16x4xf32> -> vector<2x16x4xf32>
    "tpu.trace_stop"() : () -> ()
    %74 = arith.addf %68, %73 : vector<2x16x4xf32>
    %cst_20 = arith.constant 0.000000e+00 : f32
    %75 = vector.broadcast %cst_20 : f32 to vector<2x16x4xf32>
    %76 = arith.maximumf %74, %75 : vector<2x16x4xf32>
    %77 = vector.shape_cast %76 : vector<2x16x4xf32> to vector<32x4xf32>
    %c0_21 = arith.constant 0 : index
    %c0_22 = arith.constant 0 : index
    %78 = vector.load %arg3[%c0_21, %c0_22] : memref<32x4xf32, #tpu.memory_space<vmem>>, vector<32x4xf32>
    tpu.vector_store %arg3[%c0_21, %c0_22], %77 {strides = array<i32>} : memref<32x4xf32, #tpu.memory_space<vmem>>, vector<32x4xf32>,
    return
  }
}

</mosaic_0001>

<bundles_post_ra>
// kernel: tile.8
= control target key start
LH: loop header
LB: loop body
LE: loop exit
PB: predicated region body
PF: predicated region fallthrough
CT: control target
= control target key end

     0   :  { %s22_s0 = inlined_call_operand.vmem [shape: f32[16], index: 0, kind: input, shape index: {}]   ;;  %s23_s1 = inlined_call_operand.vmem [shape: f32[2,16], index: 1, kind: output, shape index: {}]  }
   0x1   :  { %v4_v0 = vld [vmem:[%s22_s0] ss:$0 sm:$0xff] }
   0x2   :  { %5 = vst [vmem:[%s23_s1] sm:$0x3] %v4_v0 }

// kernel: tile.0
= control target key start
LH: loop header
LB: loop body
LE: loop exit
PB: predicated region body
PF: predicated region fallthrough
CT: control target
= control target key end

     0   :  { %s130_s8 = smov 127   ;;  %s131_s9 = smov 123   ;;  %vm7_vm0 = vcmask 7168   ;;  %s221_s0 = inlined_call_operand.vmem [shape: f32[2,16], index: 0, kind: input, shape index: {}]   ;;  %s222_s1 = inlined_call_operand.vmem [shape: f32[32,1], index: 1, kind: output, shape index: {}]  }
   0x1   :  { %v4_v0 = vld [vmem:[%s221_s0] sm:$0x3]  ;;  %s129_s0 = smov 125   ;;  %s132_s10 = smov 124  }
   0x2   :  { %5 = vst [vmem:[#allocation0] sm:$0x3] %v4_v0  ;;  %s133_s11 = smov 126   ;;  %s134_s12 = smov 122  }
   0x3   :  { %s135_s13 = smov 120   ;;  %s136_s14 = smov 121  }
   0x4   :  { %s137_s15 = smov 119   ;;  %s138_s16 = smov 117  }
   0x5   :  { %s139_s17 = smov 118   ;;  %s140_s18 = smov 116  }
   0x6   :  { %s141_s19 = smov 114   ;;  %s142_s20 = smov 115  }
   0x7   :  { %s143_s21 = smov 113  }
   0x9   :  { %v21_v1 = vld [vmem:[#allocation0] sm:$0x3]  }
   0xa   :  { %v9_v2 = vld [vmem:[#allocation0] sm:$0x3]   ;;  %22 = vrot.lane.b32.xlu1 %v21_v1, %s129_s0 }
   0xb   :  { %10 = vrot.lane.b32.xlu0 %v9_v2, %s130_s8  ;;  %v33_v3 = vld [vmem:[#allocation0] sm:$0x3]  }
   0xc   :  { %34 = vrot.lane.b32.xlu2 %v33_v3, %s131_s9  ;;  %v27_v4 = vld [vmem:[#allocation0] sm:$0x3]  }
   0xd   :  { %v15_v5 = vld [vmem:[#allocation0] sm:$0x3]  }
   0xe   :  { %v39_v6 = vld [vmem:[#allocation0] sm:$0x3]  }
   0xf   :  { %v51_v7 = vld [vmem:[#allocation0] sm:$0x3]  }
  0x10   :  { %v45_v8 = vld [vmem:[#allocation0] sm:$0x3]  }
  0x11   :  { %v57_v9 = vld [vmem:[#allocation0] sm:$0x3]  }
  0x12   :  { %28 = vrot.lane.b32.xlu1 %v27_v4, %s132_s10  ;;  %v69_v10 = vld [vmem:[#allocation0] sm:$0x3]  }
  0x13   :  { %16 = vrot.lane.b32.xlu0 %v15_v5, %s133_s11  ;;  %v63_v11 = vld [vmem:[#allocation0] sm:$0x3]  }
  0x14   :  { %40 = vrot.lane.b32.xlu2 %v39_v6, %s134_s12  ;;  %v75_v12 = vld [vmem:[#allocation0] sm:$0x3]  }
  0x15   :  { %v87_v13 = vld [vmem:[#allocation0] sm:$0x3]  }
  0x16   :  { %v81_v14 = vld [vmem:[#allocation0] sm:$0x3]  }
  0x17   :  { %v93_v15 = vld [vmem:[#allocation0] sm:$0x3]  }
  0x18   :  { %v6_v21 = vld [vmem:[#allocation0] sm:$0x3]  }
  0x19   :  { %8 = vst.msk [vmem:[%s222_s1] ss:$16 sm:$0x3] %vm7_vm0, %v6_v21  }
  0x1a   :  { %52 = vrot.lane.b32.xlu1 %v51_v7, %s135_s13 }
  0x1b   :  { %46 = vrot.lane.b32.xlu0 %v45_v8, %s136_s14 }
  0x1c   :  { %58 = vrot.lane.b32.xlu2 %v57_v9, %s137_s15 }
  0x22   :  { %70 = vrot.lane.b32.xlu1 %v69_v10, %s138_s16 }
  0x23   :  { %64 = vrot.lane.b32.xlu0 %v63_v11, %s139_s17 }
  0x24   :  { %76 = vrot.lane.b32.xlu2 %v75_v12, %s140_s18 }
  0x2a   :  { %88 = vrot.lane.b32.xlu1 %v87_v13, %s141_s19 }
  0x2b   :  { %82 = vrot.lane.b32.xlu0 %v81_v14, %s142_s20 }
  0x2c   :  { %94 = vrot.lane.b32.xlu2 %v93_v15, %s143_s21 }
  0x66   :  { %v35_v16 = vpop.permute.xlu2 %34  }
  0x67   :  { %103 = vst.msk [vmem:[%s222_s1 + $0x5] ss:$16 sm:$0x3] %vm7_vm0, %v35_v16  }
  0x6e   :  { %v41_v17 = vpop.permute.xlu2 %40  }
  0x6f   :  { %104 = vst.msk [vmem:[%s222_s1 + $0x6] ss:$16 sm:$0x3] %vm7_vm0, %v41_v17  }
  0x76   :  { %v59_v18 = vpop.permute.xlu2 %58  }
  0x77   :  { %107 = vst.msk [vmem:[%s222_s1 + $0x9] ss:$16 sm:$0x3] %vm7_vm0, %v59_v18  }
  0x7c   :  { %v23_v19 = vpop.permute.xlu1 %22  }
  0x7d   :  { %v11_v20 = vpop.permute.xlu0 %10   ;;  %101 = vst.msk [vmem:[%s222_s1 + $0x3] ss:$16 sm:$0x3] %vm7_vm0, %v23_v19  }
  0x7e   :  { %99 = vst.msk [vmem:[%s222_s1 + $0x1] ss:$16 sm:$0x3] %vm7_vm0, %v11_v20   ;;  %v77_v22 = vpop.permute.xlu2 %76  }
  0x7f   :  { %110 = vst.msk [vmem:[%s222_s1 + $0xc] ss:$16 sm:$0x3] %vm7_vm0, %v77_v22  }
  0x84   :  { %v29_v23 = vpop.permute.xlu1 %28  }
  0x85   :  { %v17_v24 = vpop.permute.xlu0 %16   ;;  %102 = vst.msk [vmem:[%s222_s1 + $0x4] ss:$16 sm:$0x3] %vm7_vm0, %v29_v23  }
  0x86   :  { %100 = vst.msk [vmem:[%s222_s1 + $0x2] ss:$16 sm:$0x3] %vm7_vm0, %v17_v24   ;;  %v95_v25 = vpop.permute.xlu2 %94  }
  0x87   :  { %113 = vst.msk [vmem:[%s222_s1 + $0xf] ss:$16 sm:$0x3] %vm7_vm0, %v95_v25  }
  0x8c   :  { %v53_v26 = vpop.permute.xlu1 %52  }
  0x8d   :  { %v47_v27 = vpop.permute.xlu0 %46   ;;  %106 = vst.msk [vmem:[%s222_s1 + $0x8] ss:$16 sm:$0x3] %vm7_vm0, %v53_v26  }
  0x8e   :  { %105 = vst.msk [vmem:[%s222_s1 + $0x7] ss:$16 sm:$0x3] %vm7_vm0, %v47_v27  }
  0x94   :  { %v71_v28 = vpop.permute.xlu1 %70  }
  0x95   :  { %v65_v29 = vpop.permute.xlu0 %64   ;;  %109 = vst.msk [vmem:[%s222_s1 + $0xb] ss:$16 sm:$0x3] %vm7_vm0, %v71_v28  }
  0x96   :  { %108 = vst.msk [vmem:[%s222_s1 + $0xa] ss:$16 sm:$0x3] %vm7_vm0, %v65_v29  }
  0x9c   :  { %v89_v30 = vpop.permute.xlu1 %88  }
  0x9d   :  { %v83_v31 = vpop.permute.xlu0 %82   ;;  %112 = vst.msk [vmem:[%s222_s1 + $0xe] ss:$16 sm:$0x3] %vm7_vm0, %v89_v30  }
  0x9e   :  { %111 = vst.msk [vmem:[%s222_s1 + $0xd] ss:$16 sm:$0x3] %vm7_vm0, %v83_v31  }

// kernel: ode_derivative_fun.1
= control target key start
LH: loop header
LB: loop body
LE: loop exit
PB: predicated region body
PF: predicated region fallthrough
CT: control target
= control target key end

     0   :  { %v627_v2 = vmov 32   ;;  %vm76_vm0 = vcmask 261120   ;;  %vm113_vm1 = vcmask 64512   ;;  %vm328_vm2 = vcmask 1041408   ;;  %s760_s1 = inlined_call_operand.vmem [shape: bf16[80,16], index: 1, kind: input, shape index: {}]   ;;  %s761_s0 = inlined_call_operand.vmem [shape: f32[32,33], index: 0, kind: input, shape index: {}]   ;;  %s762_s2 = inlined_call_operand.vmem [shape: f32[4,16,16], index: 2, kind: input, shape index: {}]   ;;  %s763_s3 = inlined_call_operand.vmem [shape: f32[32,4], index: 3, kind: output, shape index: {}]  }
   0x1   :  { %v588_v0 = vld [vmem:[%s760_s1 + $0x8] sm:$0xff]  ;;  %v15_v1 = vld [vmem:[%s761_s0] sm:$0xff]  ;;  %593 = vset.pattern.permute.xlu0 %v627_v2  ;;  %594 = vset.pattern.permute.xlu1 %v627_v2  ;;  %v659_v3 = vld [vmem:[%s761_s0 + $0x10] sm:$0xff]  ;;  %vm321_vm3 = vcmask 31744   ;;  %vm245_vm12 = vcmask 130048  }
   0x2   :  { %41 = vperm.xlu0 %593, %v15_v1   ;;  %89 = vmatpush.bf16.msra.mxu0 %v588_v0  ;;  %v587_v4 = vld [vmem:[%s760_s1] sm:$0xff]  ;;  %v16_v5 = vld [vmem:[%s761_s0 + $0x8] sm:$0xff]  ;;  %v18_v7 = vld [vmem:[%s761_s0 + $0x18] sm:$0xff]  ;;  %s628_s0 = smov 120  }
   0x3   :  { %51 = vperm.xlu1 %594, %v659_v3   ;;  %v19_v6 = vpack.c.bf16 %v16_v5, %v15_v1  ;;  %v20_v8 = vpack.c.bf16 %v18_v7, %v659_v3  ;;  %v25_v9 = vld [vmem:[%s760_s1 + $0x10] sm:$0x1]  ;;  %v29_v40 = vld [vmem:[%s760_s1 + $0x20] sm:$0x3]  ;;  %v589_v54 = vld [vmem:[%s760_s1 + $0x18] sm:$0xff]  ;;  %s629_s1 = smov 124  }
   0x4   :  { %v26_v10 = vunpack.c.l.bf16 %v25_v9  ;;  %v330_v41 = vsel %vm328_vm2, %v29_v40, 0  ;;  %v30_v50 = vld [vmem:[%s762_s2] sm:$0xff]  ;;  %v31_v55 = vld [vmem:[%s762_s2 + $0x8] sm:$0xff]  ;;  %259 = vmatpush.bf16.msra.mxu3 %v589_v54 }
   0x6   :  { %90 = vmatpush.bf16.msra.mxu0 %v587_v4  ;;  %v59_v12 = vperm.slane %v26_v10, 0 }
   0x9   :  { %565 = vmatmul.msk.bf16.vlgmr.msra.gmra.mxu0 %vm76_vm0, %v19_v6 }
   0xa   :  { %46 = vperm.xlu0 %593, %v16_v5  }
   0xb   :  { %56 = vperm.xlu1 %594, %v18_v7  }
  0x19   :  { %566 = vmatmul.msk.bf16.gmra.mxu0 %vm76_vm0, %v20_v8 }
  0x74   :  { %v42_v11 = vpop.permute.xlu0 %41 }
  0x75   :  { %v60_v14 = vmul.f32 %v59_v12, %v42_v11  ;;  %v52_v21 = vpop.permute.xlu1 %51  ;;  %v315_v43 = vadd.f32 %v42_v11, %v15_v1 }
  0x76   :  { %v62_v27 = vmul.f32 %v59_v12, %v52_v21  ;;  %v317_v47 = vadd.f32 %v52_v21, %v659_v3 }
  0x7c   :  { %v47_v15 = vpop.permute.xlu0 %46 }
  0x7d   :  { %v61_v17 = vmul.f32 %v59_v12, %v47_v15  ;;  %v57_v29 = vpop.permute.xlu1 %56  ;;  %v316_v44 = vadd.f32 %v47_v15, %v16_v5 }
  0x7e   :  { %v63_v31 = vmul.f32 %v59_v12, %v57_v29  ;;  %v318_v48 = vadd.f32 %v57_v29, %v18_v7 }
  0x7f   :  { %v319_v45 = vpack.c.bf16 %v316_v44, %v315_v43 }
  0x80   :  { %v320_v49 = vpack.c.bf16 %v318_v48, %v317_v47 }
  0x86   :  { %v92_v13 = vpop.f32.mrf.mxu0 }
  0x87   :  { %v93_v16 = vadd.f32 %v92_v13, %v60_v14 }
  0x89   :  { %v102_v19 = vpack.c.bf16 %v93_v16, %v93_v16 }
  0x8b   :  { %v108_v23 = vunpack.c.l.b16 %v102_v19 }
  0x8e   :  { %v94_v18 = vpop.f32.mrf.mxu0 }
  0x8f   :  { %v95_v20 = vadd.f32 %v94_v18, %v61_v17 }
  0x91   :  { %v103_v22 = vpack.c.bf16 %v95_v20, %v95_v20 }
  0x93   :  { %v109_v24 = vunpack.c.l.b16 %v103_v22 }
  0x95   :  { %v110_v25 = vpack.c.b16 %v109_v24, %v108_v23 }
  0x96   :  { %v97_v26 = vpop.f32.mrf.mxu0 }
  0x97   :  { %111 = vrot.lane.b32.xlu2 %v110_v25, %s628_s0  ;;  %v118_v28 = vsel %vm113_vm1, %v110_v25, 0  ;;  %v98_v30 = vadd.f32 %v97_v26, %v62_v27 }
  0x98   :  { %127 = vmatpush.bf16.xpose.msra.mxu1 %v118_v28 }
  0x99   :  { %v104_v33 = vpack.c.bf16 %v98_v30, %v98_v30 }
  0x9b   :  { %v136_v36 = vunpack.c.l.b16 %v104_v33 }
  0x9e   :  { %v99_v32 = vpop.f32.mrf.mxu0 }
  0x9f   :  { %v100_v34 = vadd.f32 %v99_v32, %v63_v31 }
  0xa0   :  { %339 = vmatpush.bf16.msrb.mxu1 %v330_v41 }
  0xa1   :  { %v105_v35 = vpack.c.bf16 %v100_v34, %v100_v34 }
  0xa3   :  { %v137_v37 = vunpack.c.l.b16 %v105_v35 }
  0xa5   :  { %v138_v38 = vpack.c.b16 %v137_v37, %v136_v36 }
  0xa7   :  { %139 = vrot.lane.b32.xlu2 %v138_v38, %s628_s0  ;;  %v145_v39 = vsel %vm113_vm1, %v138_v38, 0 }
  0xa8   :  { %154 = vmatpush.bf16.xpose.msra.mxu2 %v145_v39 }
  0xf1   :  { %v112_v42 = vpop.permute.xlu2 %111 }
  0xf2   :  { %567 = vmatmul.msk.bf16.vlgmr.msra.gmra.mxu1 %vm113_vm1, %v112_v42 }
 0x101   :  { %v140_v46 = vpop.permute.xlu2 %139 }
 0x102   :  { %568 = vmatmul.msk.bf16.vlgmr.msra.gmra.mxu2 %vm113_vm1, %v140_v46  ;;  %579 = vmatmul.msk.bf16.vlgmr.msrb.gmra.mxu1 %vm321_vm3, %v319_v45 }
 0x112   :  { %580 = vmatmul.msk.bf16.gmra.mxu1 %vm321_vm3, %v320_v49 }
 0x16f   :  { %v129_v51 = vpop.f32.mrf.mxu1 }
 0x170   :  { %v130_v52 = vadd.f32 %v129_v51, %v30_v50 }
 0x172   :  { %v569_v53 = vmul.f32 -1.442695, %v130_v52 }
 0x174   :  { %595 = vpow2.f32 %v569_v53 }
 0x177   :  { %v131_v56 = vpop.f32.mrf.mxu1 }
 0x178   :  { %v132_v57 = vadd.f32 %v131_v56, %v31_v55 }
 0x17a   :  { %v596_v58 = vpop.eup %595  ;;  %v570_v59 = vmul.f32 -1.442695, %v132_v57 }
 0x17b   :  { %v173_v60 = vadd.f32 1.0, %v596_v58 }
 0x17c   :  { %597 = vpow2.f32 %v570_v59 }
 0x17d   :  { %599 = vrcp.f32 %v173_v60  ;;  %vm182_vm5 = vweird.f32 %v173_v60  ;;  %v186_v19 = vand.u32 2147483647, %v173_v60  ;;  %v188_v20 = vand.u32 2147483648, %v173_v60 }
 0x17f   :  { %v341_v61 = vpop.f32.mrf.mxu1  ;;  %v189_v29 = vor.u32 1.1754944e-38, %v188_v20  ;;  %vm187_vm10 = vcmp.eq.f32.partialorder %v186_v19, 8.507059e+37 }
 0x180   :  { %v351_v3 = vpack.c.bf16 %v341_v61, %v341_v61 }
 0x182   :  { %v598_v62 = vpop.eup %597  ;;  %v386_v9 = vunpack.c.l.b16 %v351_v3 }
 0x183   :  { %v600_v63 = vpop.eup %599  ;;  %v174_v0 = vadd.f32 1.0, %v598_v62 }
 0x184   :  { %v178_v1 = vmul.f32 %v600_v63, %v173_v60  ;;  %vm183_vm4 = vweird.f32 %v600_v63 }
 0x185   :  { %601 = vrcp.f32 %v174_v0  ;;  %v156_v2 = vpop.f32.mrf.mxu2  ;;  %v203_v21 = vand.u32 2147483648, %v174_v0  ;;  %v201_v25 = vand.u32 2147483647, %v174_v0  ;;  %vm184_vm7 = vmor %vm182_vm5, %vm183_vm4  ;;  %vm197_vm8 = vweird.f32 %v174_v0 }
 0x186   :  { %v157_v4 = vadd.f32 %v156_v2, %v30_v50  ;;  %v179_v5 = vsub.f32 1.0, %v178_v1 }
 0x187   :  { %v343_v6 = vpop.f32.mrf.mxu1  ;;  %v204_v30 = vor.u32 1.1754944e-38, %v203_v21  ;;  %vm202_vm11 = vcmp.eq.f32.partialorder %v201_v25, 8.507059e+37 }
 0x188   :  { %v571_v7 = vmul.f32 -1.442695, %v157_v4  ;;  %v352_v8 = vpack.c.bf16 %v343_v6, %v343_v6  ;;  %v180_v11 = vmul.f32 %v600_v63, %v179_v5 }
 0x18a   :  { %603 = vpow2.f32 %v571_v7  ;;  %v387_v10 = vunpack.c.l.b16 %v352_v8  ;;  %v181_v17 = vadd.f32 %v600_v63, %v180_v11 }
 0x18b   :  { %v602_v12 = vpop.eup %601 }
 0x18c   :  { %v193_v13 = vmul.f32 %v602_v12, %v174_v0  ;;  %v696_v14 = vpack.c.b16 %v387_v10, %v386_v9  ;;  %vm198_vm6 = vweird.f32 %v602_v12  ;;  %v185_v27 = vsel %vm184_vm7, %v600_v63, %v181_v17 }
 0x18d   :  { %v158_v15 = vpop.f32.mrf.mxu2  ;;  %vm199_vm9 = vmor %vm197_vm8, %vm198_vm6  ;;  %v190_v32 = vsel %vm187_vm10, %v189_v29, %v185_v27 }
 0x18e   :  { %v159_v16 = vadd.f32 %v158_v15, %v31_v55  ;;  %455 = vmatpush.bf16.msrb.mxu0 %v696_v14  ;;  %v194_v18 = vsub.f32 1.0, %v193_v13 }
 0x18f   :  { %v346_v8 = vpop.f32.mrf.mxu1 }
 0x190   :  { %v604_v22 = vpop.eup %603  ;;  %v572_v23 = vmul.f32 -1.442695, %v159_v16  ;;  %v195_v24 = vmul.f32 %v602_v12, %v194_v18  ;;  %v353_v19 = vpack.c.bf16 %v346_v8, %v346_v8 }
 0x191   :  { %v175_v26 = vadd.f32 1.0, %v604_v22 }
 0x192   :  { %605 = vpow2.f32 %v572_v23  ;;  %v196_v28 = vadd.f32 %v602_v12, %v195_v24  ;;  %v416_v21 = vunpack.c.l.b16 %v353_v19 }
 0x193   :  { %607 = vrcp.f32 %v175_v26  ;;  %vm212_vm14 = vweird.f32 %v175_v26  ;;  %v218_v45 = vand.u32 2147483648, %v175_v26  ;;  %v216_v47 = vand.u32 2147483647, %v175_v26 }
 0x194   :  { %v200_v31 = vsel %vm199_vm9, %v602_v12, %v196_v28 }
 0x195   :  { %v205_v33 = vsel %vm202_vm11, %v204_v30, %v200_v31  ;;  %v219_v52 = vor.u32 1.1754944e-38, %v218_v45  ;;  %vm217_vm4 = vcmp.eq.f32.partialorder %v216_v47, 8.507059e+37 }
 0x196   :  { %v237_v34 = vpack.c.bf16 %v205_v33, %v190_v32 }
 0x197   :  { %v348_v13 = vpop.f32.mrf.mxu1 }
 0x198   :  { %v606_v35 = vpop.eup %605  ;;  %577 = vmatmul.msk.bf16.vlgmr.msra.gmra.mxu3 %vm245_vm12, %v237_v34  ;;  %v354_v17 = vpack.c.bf16 %v348_v13, %v348_v13 }
 0x199   :  { %v608_v36 = vpop.eup %607  ;;  %v176_v37 = vadd.f32 1.0, %v606_v35  ;;  %v553_v35 = vld [vmem:[%s762_s2 + $0x20] sm:$0xff] }
 0x19a   :  { %v208_v38 = vmul.f32 %v608_v36, %v175_v26  ;;  %vm213_vm13 = vweird.f32 %v608_v36  ;;  %v417_v20 = vunpack.c.l.b16 %v354_v17 }
 0x19b   :  { %609 = vrcp.f32 %v176_v37  ;;  %v233_v46 = vand.u32 2147483648, %v176_v37  ;;  %v231_v49 = vand.u32 2147483647, %v176_v37  ;;  %vm214_vm0 = vmor %vm212_vm14, %vm213_vm13  ;;  %vm227_vm1 = vweird.f32 %v176_v37 }
 0x19c   :  { %v209_v39 = vsub.f32 1.0, %v208_v38  ;;  %v418_v24 = vpack.c.b16 %v417_v20, %v416_v21 }
 0x19d   :  { %v234_v53 = vor.u32 1.1754944e-38, %v233_v46  ;;  %vm232_vm5 = vcmp.eq.f32.partialorder %v231_v49, 8.507059e+37 }
 0x19e   :  { %v210_v40 = vmul.f32 %v608_v36, %v209_v39  ;;  %v554_v39 = vld [vmem:[%s762_s2 + $0x28] sm:$0xff] }
 0x1a0   :  { %v211_v43 = vadd.f32 %v608_v36, %v210_v40  ;;  %v552_v40 = vld [vmem:[%s762_s2 + $0x18] sm:$0xff] }
 0x1a1   :  { %v610_v41 = vpop.eup %609 }
 0x1a2   :  { %v223_v42 = vmul.f32 %v610_v41, %v176_v37  ;;  %vm228_vm15 = vweird.f32 %v610_v41  ;;  %v215_v50 = vsel %vm214_vm0, %v608_v36, %v211_v43  ;;  %v551_v36 = vld [vmem:[%s762_s2 + $0x10] sm:$0xff] }
 0x1a3   :  { %vm229_vm2 = vmor %vm227_vm1, %vm228_vm15  ;;  %v220_v55 = vsel %vm217_vm4, %v219_v52, %v215_v50 }
 0x1a4   :  { %v224_v44 = vsub.f32 1.0, %v223_v42 }
 0x1a6   :  { %v225_v48 = vmul.f32 %v610_v41, %v224_v44 }
 0x1a8   :  { %v226_v51 = vadd.f32 %v610_v41, %v225_v48 }
 0x1aa   :  { %v230_v54 = vsel %vm229_vm2, %v610_v41, %v226_v51 }
 0x1ab   :  { %v235_v56 = vsel %vm232_vm5, %v234_v53, %v230_v54 }
 0x1ac   :  { %v238_v57 = vpack.c.bf16 %v235_v56, %v220_v55 }
 0x1ae   :  { %578 = vmatmul.msk.bf16.gmra.mxu3 %vm245_vm12, %v238_v57 }
 0x21b   :  { %v261_v58 = vpop.f32.mrf.mxu3 }
 0x21c   :  { %v271_v59 = vsel %vm245_vm12, %v261_v58, -inf }
 0x21d   :  { %272 = vmax.xlane.f32.xlu0 %v271_v59 }
 0x223   :  { %v263_v60 = vpop.f32.mrf.mxu3 }
 0x224   :  { %v274_v61 = vsel %vm245_vm12, %v263_v60, -inf }
 0x225   :  { %275 = vmax.xlane.f32.xlu1 %v274_v61 }
 0x231   :  { %v266_v62 = vpop.f32.mrf.mxu3 }
 0x232   :  { %v277_v63 = vsel %vm245_vm12, %v266_v62, -inf }
 0x233   :  { %278 = vmax.xlane.f32.xlu2 %v277_v63 }
 0x239   :  { %v268_v0 = vpop.f32.mrf.mxu3 }
 0x23a   :  { %v280_v1 = vsel %vm245_vm12, %v268_v0, -inf }
 0x23b   :  { %281 = vmax.xlane.f32.xlu2 %v280_v1 }
 0x23e   :  { %389 = vrot.lane.b32.xlu1 %v696_v14, %s629_s1 }
 0x290   :  { %v273_v2 = vpop.xlane.xlu0 %272 }
 0x291   :  { %v283_v3 = vsub.f32 %v261_v58, %v273_v2  ;;  %v556_v2 = vld [vmem:[%s762_s2 + $0x38] sm:$0xff] }
 0x293   :  { %v287_v4 = vmul.f32 1.442695, %v283_v3 }
 0x295   :  { %611 = vpow2.f32 %v287_v4 }
 0x298   :  { %v276_v5 = vpop.xlane.xlu1 %275 }
 0x299   :  { %v284_v6 = vsub.f32 %v263_v60, %v276_v5  ;;  %v555_v60 = vld [vmem:[%s762_s2 + $0x30] sm:$0xff] }
 0x29b   :  { %v612_v7 = vpop.eup %611  ;;  %v289_v9 = vmul.f32 1.442695, %v284_v6 }
 0x29c   :  { %v295_v10 = vsel %vm245_vm12, %v612_v7, 0.0 }
 0x29d   :  { %613 = vpow2.f32 %v289_v9  ;;  %296 = vadd.xlane.f32.xlu0 %v295_v10 }
 0x2a3   :  { %v614_v11 = vpop.eup %613 }
 0x2a4   :  { %v298_v12 = vsel %vm245_vm12, %v614_v11, 0.0 }
 0x2a5   :  { %299 = vadd.xlane.f32.xlu1 %v298_v12 }
 0x2a6   :  { %v279_v15 = vpop.xlane.xlu2 %278 }
 0x2a7   :  { %v285_v16 = vsub.f32 %v266_v62, %v279_v15 }
 0x2a9   :  { %v291_v18 = vmul.f32 1.442695, %v285_v16 }
 0x2ab   :  { %615 = vpow2.f32 %v291_v18 }
 0x2ae   :  { %v282_v22 = vpop.xlane.xlu2 %281 }
 0x2af   :  { %v286_v23 = vsub.f32 %v268_v0, %v282_v22 }
 0x2b0   :  { %v390_v25 = vpop.permute.xlu1 %389 }
 0x2b1   :  { %v616_v26 = vpop.eup %615  ;;  %v293_v27 = vmul.f32 1.442695, %v286_v23  ;;  %402 = vmatpush.bf16.msrb.mxu2 %v390_v25 }
 0x2b2   :  { %v301_v28 = vsel %vm245_vm12, %v616_v26, 0.0 }
 0x2b3   :  { %617 = vpow2.f32 %v293_v27  ;;  %302 = vadd.xlane.f32.xlu2 %v301_v28 }
 0x2b5   :  { %478 = vmatpush.bf16.msra.mxu2 %v418_v24 }
 0x2b9   :  { %v618_v29 = vpop.eup %617 }
 0x2ba   :  { %v304_v30 = vsel %vm245_vm12, %v618_v29, 0.0 }
 0x2bb   :  { %305 = vadd.xlane.f32.xlu0 %v304_v30 }
 0x2be   :  { %515 = vrot.lane.b32.xlu1 %v418_v24, %s628_s0 }
 0x2cb   :  { %419 = vrot.lane.b32.xlu2 %v418_v24, %s629_s1 }
 0x2cf   :  { %490 = vrot.lane.b32.xlu0 %v696_v14, %s628_s0 }
 0x310   :  { %v297_v31 = vpop.xlane.xlu0 %296 }
 0x311   :  { %619 = vrcp.f32 %v297_v31 }
 0x317   :  { %v620_v32 = vpop.eup %619 }
 0x318   :  { %v300_v33 = vpop.xlane.xlu1 %299  ;;  %v715_v34 = vmul.f32 %v620_v32, %v612_v7 }
 0x319   :  { %621 = vrcp.f32 %v300_v33 }
 0x31a   :  { %v357_v37 = vmul.f32 %v553_v35, %v715_v34  ;;  %v355_v38 = vmul.f32 %v551_v36, %v715_v34  ;;  %v359_v24 = vmul.f32 %v555_v60, %v715_v34 }
 0x31c   :  { %v369_v43 = vpack.c.bf16 %v357_v37, %v357_v37  ;;  %v367_v45 = vpack.c.bf16 %v355_v38, %v355_v38 }
 0x31e   :  { %v381_v49 = vunpack.c.l.b16 %v369_v43  ;;  %v441_v51 = vunpack.c.l.b16 %v367_v45 }
 0x31f   :  { %v622_v14 = vpop.eup %621 }
 0x320   :  { %v312_v41 = vmul.f32 %v622_v14, %v614_v11 }
 0x322   :  { %v358_v42 = vmul.f32 %v554_v39, %v312_v41  ;;  %v356_v44 = vmul.f32 %v552_v40, %v312_v41  ;;  %v360_v23 = vmul.f32 %v556_v2, %v312_v41 }
 0x324   :  { %v370_v46 = vpack.c.bf16 %v358_v42, %v358_v42  ;;  %v368_v47 = vpack.c.bf16 %v356_v44, %v356_v44  ;;  %v372_v25 = vpack.c.bf16 %v360_v23, %v360_v23 }
 0x326   :  { %v303_v48 = vpop.xlane.xlu2 %302  ;;  %v382_v50 = vunpack.c.l.b16 %v370_v46  ;;  %v442_v52 = vunpack.c.l.b16 %v368_v47  ;;  %v488_v27 = vunpack.c.l.b16 %v372_v25 }
 0x327   :  { %623 = vrcp.f32 %v303_v48 }
 0x328   :  { %v383_v53 = vpack.c.b16 %v382_v50, %v381_v49  ;;  %v443_v54 = vpack.c.b16 %v442_v52, %v441_v51 }
 0x32a   :  { %581 = vmatmul.msk.bf16.vlgmr.msrb.gmra.mxu2 %vm245_vm12, %v383_v53  ;;  %583 = vmatmul.msk.bf16.vlgmr.msrb.gmra.mxu0 %vm245_vm12, %v443_v54 }
 0x32d   :  { %v624_v55 = vpop.eup %623 }
 0x32e   :  { %v306_v56 = vpop.xlane.xlu0 %305  ;;  %v420_v57 = vpop.permute.xlu2 %419  ;;  %v313_v58 = vmul.f32 %v624_v55, %v616_v26  ;;  %v371_v26 = vpack.c.bf16 %v359_v24, %v359_v24 }
 0x32f   :  { %625 = vrcp.f32 %v306_v56  ;;  %432 = vmatpush.bf16.msrb.mxu3 %v420_v57 }
 0x330   :  { %v516_v59 = vpop.permute.xlu1 %515  ;;  %v365_v61 = vmul.f32 %v555_v60, %v313_v58  ;;  %v361_v62 = vmul.f32 %v551_v36, %v313_v58  ;;  %v363_v63 = vmul.f32 %v553_v35, %v313_v58  ;;  %v487_v28 = vunpack.c.l.b16 %v371_v26 }
 0x331   :  { %528 = vmatpush.bf16.msra.mxu0 %v516_v59 }
 0x332   :  { %v377_v3 = vpack.c.bf16 %v365_v61, %v365_v61  ;;  %v373_v4 = vpack.c.bf16 %v361_v62, %v361_v62  ;;  %v375_v8 = vpack.c.bf16 %v363_v63, %v363_v63 }
 0x334   :  { %v512_v12 = vunpack.c.l.b16 %v377_v3  ;;  %v464_v13 = vunpack.c.l.b16 %v373_v4  ;;  %v411_v17 = vunpack.c.l.b16 %v375_v8 }
 0x335   :  { %v626_v0 = vpop.eup %625 }
 0x336   :  { %v314_v1 = vmul.f32 %v626_v0, %v618_v29  ;;  %v489_v29 = vpack.c.b16 %v488_v27, %v487_v28 }
 0x338   :  { %v362_v5 = vmul.f32 %v552_v40, %v314_v1  ;;  %v366_v6 = vmul.f32 %v556_v2, %v314_v1  ;;  %v364_v7 = vmul.f32 %v554_v39, %v314_v1 }
 0x33a   :  { %v374_v9 = vpack.c.bf16 %v362_v5, %v362_v5  ;;  %v378_v10 = vpack.c.bf16 %v366_v6, %v366_v6  ;;  %v376_v11 = vpack.c.bf16 %v364_v7, %v364_v7 }
 0x33c   :  { %v465_v15 = vunpack.c.l.b16 %v374_v9  ;;  %v513_v16 = vunpack.c.l.b16 %v378_v10  ;;  %v412_v18 = vunpack.c.l.b16 %v376_v11 }
 0x33e   :  { %v413_v19 = vpack.c.b16 %v412_v18, %v411_v17  ;;  %v466_v20 = vpack.c.b16 %v465_v15, %v464_v13  ;;  %v514_v21 = vpack.c.b16 %v513_v16, %v512_v12 }
 0x340   :  { %582 = vmatmul.msk.bf16.vlgmr.msrb.gmra.mxu3 %vm245_vm12, %v413_v19  ;;  %584 = vmatmul.msk.bf16.vlgmr.msra.gmra.mxu2 %vm245_vm12, %v466_v20 }
 0x341   :  { %586 = vmatmul.msk.bf16.vlgmr.msra.gmra.mxu0 %vm245_vm12, %v514_v21  ;;  %v491_v22 = vpop.permute.xlu0 %490 }
 0x342   :  { %503 = vmatpush.bf16.msra.mxu3 %v491_v22 }
 0x350   :  { %585 = vmatmul.msk.bf16.vlgmr.msra.gmra.mxu3 %vm245_vm12, %v489_v29 }
 0x3a7   :  { %v457_v30 = vpop.f32.mrf.mxu0 }
 0x3ad   :  { %v404_v31 = vpop.f32.mrf.mxu2 }
 0x3ae   :  { %v458_v45 = vadd.f32 %v457_v30, %v404_v31 }
 0x3af   :  { %v459_v32 = vpop.f32.mrf.mxu0 }
 0x3b5   :  { %v406_v33 = vpop.f32.mrf.mxu2 }
 0x3b6   :  { %v460_v49 = vadd.f32 %v459_v32, %v406_v33 }
 0x3be   :  { %v530_v35 = vpop.f32.mrf.mxu0 }
 0x3c3   :  { %v434_v36 = vpop.f32.mrf.mxu3  ;;  %v480_v37 = vpop.f32.mrf.mxu2 }
 0x3c4   :  { %v481_v38 = vadd.f32 %v480_v37, %v434_v36 }
 0x3c6   :  { %v537_v14 = vadd.f32 %v530_v35, %v481_v38  ;;  %v532_v42 = vpop.f32.mrf.mxu0 }
 0x3c8   :  { %v541_v39 = vmax.f32 %v537_v14, 0.0 }
 0x3ca   :  { %545 = vst.msk [vmem:[%s763_s3 + $0x10] sm:$0xff] %vm321_vm3, %v541_v39 }
 0x3cb   :  { %v436_v34 = vpop.f32.mrf.mxu3  ;;  %v482_v40 = vpop.f32.mrf.mxu2 }
 0x3cc   :  { %v483_v41 = vadd.f32 %v482_v40, %v436_v34 }
 0x3ce   :  { %v538_v43 = vadd.f32 %v532_v42, %v483_v41 }
 0x3d0   :  { %v542_v44 = vmax.f32 %v538_v43, 0.0 }
 0x3d2   :  { %546 = vst.msk [vmem:[%s763_s3 + $0x18] sm:$0xff] %vm321_vm3, %v542_v44 }
 0x3d3   :  { %v505_v46 = vpop.f32.mrf.mxu3 }
 0x3d4   :  { %v535_v47 = vadd.f32 %v505_v46, %v458_v45 }
 0x3d6   :  { %v539_v48 = vmax.f32 %v535_v47, 0.0 }
 0x3d8   :  { %543 = vst.msk [vmem:[%s763_s3] sm:$0xff] %vm321_vm3, %v539_v48 }
 0x3db   :  { %v507_v50 = vpop.f32.mrf.mxu3 }
 0x3dc   :  { %v536_v51 = vadd.f32 %v507_v50, %v460_v49 }
 0x3de   :  { %v540_v52 = vmax.f32 %v536_v51, 0.0 }
 0x3e0   :  { %544 = vst.msk [vmem:[%s763_s3 + $0x8] sm:$0xff] %vm321_vm3, %v540_v52 }

</bundles_post_ra>
